<compile_context>
chip_gen: v6e
topology: v6e:2x2x1
jax: 0.10.0
libtpu: 0.0.40
codegen_flags: <defaults>
</compile_context>

<pallas_src>
import math

import jax
import jax.numpy as jnp
from jax.experimental import pallas as pl
from jax.experimental.pallas import tpu as pltpu


def _mel_scale_kernel(x_ref, o_ref):
    # Pure elementwise hot path; tanh rides the EUP slot, everything else VPU.
    x = x_ref[...].astype(jnp.float32)
    y = jnp.tanh(x * x * 0.001 + 1.0) * 2595.0
    # torch .type(torch.CharTensor): truncate toward zero, wrap into int8.
    # f32->s32 rounds toward zero; s32->s8 bit-truncates (wraps mod 256).
    o_ref[...] = y.astype(jnp.int32).astype(jnp.int8)


def _round_up(a: int, b: int) -> int:
    return ((a + b - 1) // b) * b


def _pick_cols(total: int, tile_cols: int):
    """Largest multiple of 128 that divides `total`, preferring >= tile_cols.

    Returns None if total is not divisible by 128 (fallback to padding)."""
    if total % 128 != 0:
        return None
    best = None
    c = 128
    limit = min(total, 8 * tile_cols)   # at most ~64 candidates
    while c <= limit:
        if total % c == 0:
            best = c
            if c >= tile_cols:
                break
        c += 128
    return best


def mel_scale(x, *, tile_rows: int = 1024, tile_cols: int = 1024):
    """x: (N, ...) float array -> (N, prod(rest)) int8 array."""
    n = x.shape[0]
    d = math.prod(x.shape[1:])
    total = n * d

    flat = x.reshape(total)

    # ---- lane-dense re-layout (exact divisor -> no pad/slice) --------------
    cols = _pick_cols(total, tile_cols)
    if cols is None:
        # Rare fallback: total not a multiple of 128 -> pad once, slice once.
        cols = tile_cols if total >= tile_cols else _round_up(total, 128)
        rows = pl.cdiv(total, cols)
        padded = rows * cols
        if padded != total:
            flat = jnp.pad(flat, (0, padded - total))
    else:
        rows = total // cols
        padded = total
    x2d = flat.reshape(rows, cols)

    # ---- row-block size: ~tile_rows*tile_cols elems/block (~4 MiB f32) -----
    block_elems = tile_rows * tile_cols
    tr = max(1, block_elems // cols)
    if tr >= rows:
        tr = rows                       # single block; shape == full dims
    else:
        tr = max(32, (tr // 32) * 32)   # dense int8 stores: 32-sublane multiple
        tr = min(tr, rows)
    grid = (pl.cdiv(rows, tr),)         # ragged last block handled by Pallas

    out2d = pl.pallas_call(
        _mel_scale_kernel,
        out_shape=jax.ShapeDtypeStruct((rows, cols), jnp.int8),
        grid=grid,
        in_specs=[pl.BlockSpec((tr, cols), lambda i: (i, 0))],
        out_specs=pl.BlockSpec((tr, cols), lambda i: (i, 0)),
        compiler_params=pltpu.CompilerParams(
            dimension_semantics=("parallel",)),
        cost_estimate=pl.CostEstimate(
            flops=5 * padded,
            transcendentals=padded,
            bytes_accessed=5 * padded),   # 4 B read + 1 B written per element
    )(x2d)

    out = out2d.reshape(padded)
    if padded != total:
        out = out[:total]
    return out.reshape(n, d)


if __name__ == "__main__":
    key = jax.random.PRNGKey(0)
    # Small NCHW input consistent with the module's forward.
    x = jax.random.normal(key, (2, 4, 16, 16), dtype=jnp.float32)

    y = mel_scale(x)
    jax.block_until_ready(y)

    # Pure-JAX reference of the same math (trunc + wrap-to-int8 semantics).
    xf = x.reshape(2, -1).astype(jnp.float32)
    ref = jnp.tanh(xf * xf * 0.001 + 1.0) * 2595.0
    ref = ((jnp.trunc(ref).astype(jnp.int32) + 128) & 255) - 128
    ref = ref.astype(jnp.int8)

    assert y.shape == (2, 4 * 16 * 16) and y.dtype == jnp.int8
    assert bool(jnp.all(y == ref))

    print("KERNEL_OK")
</pallas_src>

<mosaic_0001>
module attributes {stable_mosaic.version = 11 : i64} {
  func.func @_mel_scale_kernel(%arg0: i32, %arg1: memref<2x1024xf32, #tpu.memory_space<vmem>>, %arg2: memref<2x1024xi8, #tpu.memory_space<vmem>>) attributes {dimension_semantics = [#tpu.dimension_semantics<parallel>], iteration_bounds = array<i64: 1>, scalar_prefetch = 0 : i64, scratch_operands = 0 : i64, tpu.core_type = #tpu.core_type<tc>, window_params = [{transform_indices = @transform_0, window_bounds = array<i64: 2, 1024>}, {transform_indices = @transform_1, window_bounds = array<i64: 2, 1024>}]} {
    %c0 = arith.constant 0 : index
    %c0_0 = arith.constant 0 : index
    %0 = vector.load %arg1[%c0, %c0_0] : memref<2x1024xf32, #tpu.memory_space<vmem>>, vector<2x1024xf32>
    %1 = arith.mulf %0, %0 : vector<2x1024xf32>
    %cst = arith.constant 1.000000e-03 : f32
    %2 = vector.broadcast %cst : f32 to vector<2x1024xf32>
    %3 = arith.mulf %1, %2 : vector<2x1024xf32>
    %cst_1 = arith.constant 1.000000e+00 : f32
    %4 = vector.broadcast %cst_1 : f32 to vector<2x1024xf32>
    %5 = arith.addf %3, %4 : vector<2x1024xf32>
    %6 = math.tanh %5 : vector<2x1024xf32>
    %cst_2 = arith.constant 2.595000e+03 : f32
    %7 = vector.broadcast %cst_2 : f32 to vector<2x1024xf32>
    %8 = arith.mulf %6, %7 : vector<2x1024xf32>
    %9 = arith.fptosi %8 : vector<2x1024xf32> to vector<2x1024xi32>
    %10 = arith.trunci %9 : vector<2x1024xi32> to vector<2x1024xi8>
    %c0_3 = arith.constant 0 : index
    %c0_4 = arith.constant 0 : index
    %11 = vector.load %arg2[%c0_3, %c0_4] : memref<2x1024xi8, #tpu.memory_space<vmem>>, vector<2x1024xi8>
    tpu.vector_store %arg2[%c0_3, %c0_4], %10 {strides = array<i32>} : memref<2x1024xi8, #tpu.memory_space<vmem>>, vector<2x1024xi8>,
    return
  }
  func.func @transform_0(%arg0: i32) -> (i32, i32) {
    %c0_i32 = arith.constant 0 : i32
    %c0_i32_0 = arith.constant 0 : i32
    return %arg0, %c0_i32 : i32, i32
  }
  func.func @transform_1(%arg0: i32) -> (i32, i32) {
    %c0_i32 = arith.constant 0 : i32
    %c0_i32_0 = arith.constant 0 : i32
    return %arg0, %c0_i32 : i32, i32
  }
}

</mosaic_0001>

<bundles_post_ra>
// kernel: tpu_custom_call.1
= control target key start
LH: loop header
LB: loop body
LE: loop exit
PB: predicated region body
PF: predicated region fallthrough
CT: control target
= control target key end

     0   :  { %6 = vsyncpa [#allocation3], 0  ;;  %s305_s0 = inlined_call_operand.hbm [shape: f32[2,1024], index: 0, kind: input, shape index: {}]   ;;  %s306_s1 = inlined_call_operand.hbm [shape: s8[2,1024], index: 1, kind: output, shape index: {}]  }
   0x1   :  { %7 = vsyncpa [#allocation4], 0  ;;  %s243_s6 = smov [#allocation2]  }
   0x2   :  { %s14_s7 = sshll.u32 %s243_s6, 4  ;;  %s15_s7 = int_to_ptr.vmem [resolvable:$true] %s14_s7 }
   0x3   :  { %s207_s8 = scalar_lea.vmem %s15_s7, 256  ;;  %p212_p1 = scmp.lt.s32.totalorder %s15_s7, %s15_s7 }
   0x4   :  { %p208_p0 = scmp.ne.s32.totalorder %s15_s7, %s207_s8  ;;  %p213_p2 = scmp.lt.s32.totalorder %s207_s8, %s207_s8 }
   0x6   :  { %p214_p3 = por %p213_p2, %p212_p1 }
   0x8   :  { %p215_p4 = pnand %p214_p3, %p208_p0 }
   0xa   :  { %218 = shalt.err (!%p215_p4)
}
   0xb   :  { %17 = dma.hbm_to_vmem [thread:$0]  %s305_s0, 256, %s15_s7, [#allocation3]  }
   0xc   :  { %239 = dma.done.wait [#allocation3], 256  }
   0xd   :  { %240 = vsyncadd [#allocation3], 4294967040  ;;  %v21_v0 = vld [vmem:[#allocation2] sm:$0xff]  ;;  %v22_v1 = vld [vmem:[#allocation2 + $0x8] sm:$0xff]  ;;  %vm134_vm0 = vcmask 1040384   ;;  %vm137_vm2 = vcmask 1041409   ;;  %v39_v10 = vlaneseq }
   0xe   :  { %v23_v2 = vmul.f32 %v21_v0, %v21_v0  ;;  %v24_v3 = vmul.f32 %v22_v1, %v22_v1  ;;  %vm135_vm1 = vsmask.f32 256  ;;  %vm138_vm3 = vsmask.f32 1280  ;;  %s246_s0 = smov [#allocation5]   ;;  %v165_v62 = vld [vmem:[#allocation5] sm:$0xff] }
   0xf   :  { %v244_v8 = vmov 1983009808   ;;  %vm260_vm4 = vmand %vm134_vm0, %vm135_vm1  ;;  %vm141_vm6 = vcmask 1042434   ;;  %vm142_vm7 = vsmask.f32 2304  ;;  %v40_v14 = vshrl.u32 %v39_v10, 7 }
  0x10   :  { %v25_v4 = vmul.f32 0.001, %v23_v2  ;;  %v26_v5 = vmul.f32 0.001, %v24_v3  ;;  %v37_v9 = vunpack.c.l.s4 %v244_v8  ;;  %vm264_vm5 = vmand %vm137_vm2, %vm138_vm3  ;;  %vm145_vm10 = vcmask 1043459   ;;  %s174_s11 = sshll.u32 %s246_s0, 4  ;;  %s175_s11 = int_to_ptr.vmem [resolvable:$true] %s174_s11 }
  0x11   :  { %vm140_vm8 = vmor %vm264_vm5, %vm260_vm4  ;;  %vm146_vm11 = vsmask.f32 3328  ;;  %v245_v21 = vmov 1966171168   ;;  %vm149_vm14 = vcmask 1044484   ;;  %vm153_vm2 = vcmask 1045509   ;;  %p224_p6 = scmp.lt.s32.totalorder %s175_s11, %s175_s11 }
  0x12   :  { %v27_v6 = vadd.f32 1.0, %v25_v4  ;;  %v28_v7 = vadd.f32 1.0, %v26_v5  ;;  %v38_v13 = vunpack.c.0.s8 %v37_v9  ;;  %vm143_vm9 = vmand %vm141_vm6, %vm142_vm7  ;;  %v90_v22 = vunpack.c.l.s4 %v245_v21  ;;  %s219_s12 = scalar_lea.vmem %s175_s11, 128 }
  0x13   :  { %vm272_vm12 = vmor %vm143_vm9, %vm140_vm8  ;;  %vm150_vm15 = vsmask.f32 4352  ;;  %vm154_vm3 = vsmask.f32 5376  ;;  %vm157_vm6 = vcmask 1046534   ;;  %p220_p5 = scmp.ne.s32.totalorder %s175_s11, %s219_s12  ;;  %p225_p7 = scmp.lt.s32.totalorder %s219_s12, %s219_s12 }
  0x14   :  { %195 = vtanh.f32 %v27_v6  ;;  %v41_v20 = vsub.s32 %v38_v13, %v40_v14  ;;  %vm276_vm13 = vmand %vm145_vm10, %vm146_vm11  ;;  %v91_v30 = vunpack.c.0.s8 %v90_v22  ;;  %vm158_vm7 = vsmask.f32 6400 }
  0x15   :  { %197 = vtanh.f32 %v28_v7  ;;  %vm148_vm0 = vmor %vm276_vm13, %vm272_vm12  ;;  %vm161_vm10 = vcmask 1047559   ;;  %vm162_vm11 = vsmask.f32 7424  ;;  %p226_p8 = por %p225_p7, %p224_p6 }
  0x16   :  { %vm151_vm1 = vmand %vm149_vm14, %vm150_vm15  ;;  %v94_v42 = vsub.s32 %v91_v30, %v40_v14 }
  0x17   :  { %vm289_vm4 = vmor %vm151_vm1, %vm148_vm0  ;;  %p227_p9 = pnand %p226_p8, %p220_p5 }
  0x18   :  { %vm294_vm5 = vmand %vm153_vm2, %vm154_vm3 }
  0x19   :  { %vm156_vm8 = vmor %vm294_vm5, %vm289_vm4 }
  0x1a   :  { %vm159_vm9 = vmand %vm157_vm6, %vm158_vm7 }
  0x1b   :  { %vm160_vm12 = vmor %vm159_vm9, %vm156_vm8 }
  0x1c   :  { %vm163_vm13 = vmand %vm161_vm10, %vm162_vm11 }
  0x1d   :  { %vm164_vm14 = vmor %vm163_vm13, %vm160_vm12 }
  0x21   :  { %v196_v15 = vpop.eup %195 }
  0x22   :  { %v198_v16 = vpop.eup %197  ;;  %v31_v17 = vmul.f32 2595.0, %v196_v15 }
  0x23   :  { %v32_v18 = vmul.f32 2595.0, %v198_v16 }
  0x24   :  { %v187_v19 = vtrunc.f32 %v31_v17 }
  0x25   :  { %v189_v24 = vtrunc.f32 %v32_v18 }
  0x26   :  { %v188_v26 = vcvt.f32.s32 %v187_v19 }
  0x27   :  { %v190_v27 = vcvt.f32.s32 %v189_v24 }
  0x28   :  { %v35_v28 = vcombine.high %v188_v26, %v188_v26  ;;  %v42_v29 = vrot.slane %v188_v26, %v41_v20 }
  0x29   :  { %v52_v31 = vcombine.high %v190_v27, %v190_v27  ;;  %v59_v32 = vrot.slane %v190_v27, %v41_v20 }
  0x2a   :  { %v49_v33 = vrot.slane %v35_v28, %v41_v20  ;;  %v50_v34 = vcombine.high %v42_v29, %v42_v29  ;;  %v69_v35 = vpack.c.b16 %v42_v29, %v42_v29 }
  0x2b   :  { %v66_v36 = vrot.slane %v52_v31, %v41_v20  ;;  %v67_v37 = vcombine.high %v59_v32, %v59_v32  ;;  %v77_v38 = vpack.c.b16 %v59_v32, %v59_v32 }
  0x2c   :  { %v51_v39 = vcombine.high %v49_v33, %v49_v33  ;;  %v71_v40 = vpack.c.b16 %v50_v34, %v50_v34  ;;  %v73_v41 = vpack.c.b16 %v49_v33, %v49_v33 }
  0x2d   :  { %v68_v44 = vcombine.high %v66_v36, %v66_v36  ;;  %v79_v45 = vpack.c.b16 %v67_v37, %v67_v37  ;;  %v81_v46 = vpack.c.b16 %v66_v36, %v66_v36 }
  0x2e   :  { %v75_v48 = vpack.c.b16 %v51_v39, %v51_v39  ;;  %v183_v49 = vpack.c.b8 %v71_v40, %v69_v35 }
  0x2f   :  { %v83_v50 = vpack.c.b16 %v68_v44, %v68_v44  ;;  %v185_v51 = vpack.c.b8 %v79_v45, %v77_v38 }
  0x30   :  { %v184_v52 = vpack.c.b8 %v75_v48, %v73_v41  ;;  %v95_v53 = vrot.slane %v183_v49, %v94_v42 }
  0x31   :  { %v186_v54 = vpack.c.b8 %v83_v50, %v81_v46  ;;  %v109_v55 = vrot.slane %v185_v51, %v94_v42 }
  0x32   :  { %v102_v56 = vrot.slane %v184_v52, %v94_v42 }
  0x33   :  { %v116_v57 = vrot.slane %v186_v54, %v94_v42 }
  0x34   :  { %v117_v58 = vcombine.low %v95_v53, %v102_v56 }
  0x35   :  { %v118_v59 = vcombine.low %v109_v55, %v116_v57 }
  0x36   :  { %v125_v60 = vrot.slane %v117_v58, %v94_v42 }
  0x37   :  { %v132_v61 = vrot.slane %v118_v59, %v94_v42 }
  0x39   :  { %v133_v63 = vcombine.low %v125_v60, %v132_v61 }
  0x3b   :  { %v166_v0 = vsel %vm164_vm14, %v133_v63, %v165_v62 }
  0x3c   :  { %167 = vst [vmem:[#allocation5] sm:$0xff] %v166_v0 }
  0x3d   :  { %230 = shalt.err (!%p227_p9)
}
  0x3e   :  { %177 = dma.vmem_to_hbm [thread:$0]  %s175_s11, 128, %s306_s1, [#allocation4]  }
  0x3f   :  { %241 = dma.done.wait [#allocation4], 128  }
  0x40   :  { %242 = vsyncadd [#allocation4], 4294967168 }
  0x41   :  { %181 = vsyncpa [#allocation3], 1 }
  0x42   :  { %182 = vsyncpa [#allocation4], 1 }

</bundles_post_ra>
